<compile_context>
chip_gen: v5e
topology: v5e:2x2
jax: 0.10.0
libtpu: 0.0.40
codegen_flags: <defaults>
</compile_context>

<pallas_src>
import functools

import jax
import jax.numpy as jnp
from jax.experimental import pallas as pl
from jax.experimental.pallas import tpu as pltpu

EPS = 1e-5       # nn.BatchNorm2d default eps
SLOPE = 0.01     # nn.LeakyReLU default negative_slope


# ----------------------------------------------------------------------------
# Fused Pallas kernel: conv+BN+LReLU -> conv+BN+LReLU -> conv+BN
# ----------------------------------------------------------------------------
def _branch3_kernel(x_ref, r1_ref, r2_ref, r3_ref, scale_ref, shift_ref,
                    o_ref, apad_ref, *, H, W, Cout):
    """One batch element per grid step; all intermediates stay in VMEM.

    x_ref:     (1, H+2, W*Cin)  bf16 input, lane-folded, row halo already zero
    r*_ref:    (W*Cin_l, 3*W*Cout) bf16 block-banded weight matrices
    scale_ref: (3, W*Cout)      folded BN scale per layer (tiled over W)
    shift_ref: (3, W*Cout)      folded BN shift per layer (incl. conv bias)
    o_ref:     (1, H, W*Cout)   f32 lane-dense output
    apad_ref:  (H+2, W*Cout)    bf16 activation scratch with row halo
    """
    WCo = W * Cout

    # Zero only the two halo rows every grid step (megacore-safe; interior is
    # fully overwritten by each layer's store).
    apad_ref[0:1, :] = jnp.zeros((1, WCo), apad_ref.dtype)
    apad_ref[H + 1:H + 2, :] = jnp.zeros((1, WCo), apad_ref.dtype)

    def conv_bn(lhs, r_ref, layer, relu):
        # Single MXU matmul: kw taps + channel mixing are inside the banded RHS.
        p = jnp.dot(lhs, r_ref[...], preferred_element_type=jnp.float32)
        # kh accumulation: lane-tile-aligned slices of the f32 result.
        y = (p[0:H, 0:WCo]
             + p[1:H + 1, WCo:2 * WCo]
             + p[2:H + 2, 2 * WCo:3 * WCo])
        y = y * scale_ref[layer:layer + 1, :] + shift_ref[layer:layer + 1, :]
        if relu:
            y = jnp.where(y > 0, y, SLOPE * y)            # LeakyReLU (f32)
        return y                                          # (H, W*Cout) f32

    y1 = conv_bn(x_ref[0], r1_ref, 0, relu=True)
    apad_ref[1:1 + H, :] = y1.astype(apad_ref.dtype)
    y2 = conv_bn(apad_ref[...], r2_ref, 1, relu=True)
    apad_ref[1:1 + H, :] = y2.astype(apad_ref.dtype)
    y3 = conv_bn(apad_ref[...], r3_ref, 2, relu=False)    # no final activation
    o_ref[0] = y3.astype(o_ref.dtype)                     # lane-dense store


# ----------------------------------------------------------------------------
# Wrapper helpers
# ----------------------------------------------------------------------------
def fold_bn(conv_b, gamma, beta, mean, var):
    scale = gamma / jnp.sqrt(var + EPS)
    shift = beta + (conv_b - mean) * scale
    return scale, shift


def _make_band_rhs(w_hwio, W):
    """Block-banded weight matrix for the lane-folded conv matmul.

    w_hwio: (3, 3, Cin, Cout).  Returns R of shape (W*Cin, 3*W*Cout) with
    R[i*Cin + c, kh*(W*Cout) + j*Cout + co] = w[kh, i-j+1, c, co]  if the kw
    index i-j+1 is in [0, 3), else 0.  Boundary (SAME padding) in the W
    direction is handled by the zero entries of R.
    """
    _, _, Cin, Cout = w_hwio.shape
    i = jnp.arange(W)[:, None]          # input spatial column
    j = jnp.arange(W)[None, :]          # output spatial column
    d = i - j + 1                       # kw index
    valid = ((d >= 0) & (d <= 2)).astype(w_hwio.dtype)
    d_c = jnp.clip(d, 0, 2)
    # blocks[kh, i, j, c, co] = w[kh, d[i,j], c, co] * valid[i,j]
    blocks = w_hwio[:, d_c] * valid[None, :, :, None, None]
    # rows ordered (i, c), columns ordered (kh, j, co)
    return blocks.transpose(1, 3, 0, 2, 4).reshape(W * Cin, 3 * W * Cout)


# ----------------------------------------------------------------------------
# Wrapper (NCHW in / NCHW out, matching the PyTorch module)
# ----------------------------------------------------------------------------
def branch3_forward(x_nchw, params):
    """params: list of 3 dicts {w:(3,3,Ci,Co) HWIO, b, gamma, beta, mean, var}."""
    x = jnp.transpose(x_nchw, (0, 2, 3, 1))               # NCHW -> NHWC
    N, H, W, Cin = x.shape
    Cout = params[0]["w"].shape[-1]
    WCo = W * Cout

    # Lane-fold, cast to bf16 and add the 1-row halo once in the wrapper.
    x2 = x.reshape(N, H, W * Cin).astype(jnp.bfloat16)
    x2 = jnp.pad(x2, ((0, 0), (1, 1), (0, 0)))            # (N, H+2, W*Cin)

    rhs, scales, shifts = [], [], []
    for p in params:
        rhs.append(_make_band_rhs(p["w"], W).astype(jnp.bfloat16))
        s, sh = fold_bn(p["b"], p["gamma"], p["beta"], p["mean"], p["var"])
        scales.append(jnp.tile(s, W))                     # (W*Cout,), co fastest
        shifts.append(jnp.tile(sh, W))
    scale = jnp.stack(scales).astype(jnp.float32)         # (3, W*Cout)
    shift = jnp.stack(shifts).astype(jnp.float32)

    kernel = functools.partial(_branch3_kernel, H=H, W=W, Cout=Cout)
    y = pl.pallas_call(
        kernel,
        out_shape=jax.ShapeDtypeStruct((N, H, WCo), jnp.float32),
        grid=(N,),
        in_specs=[
            pl.BlockSpec((1, H + 2, W * Cin), lambda n: (n, 0, 0)),
            pl.BlockSpec(rhs[0].shape, lambda n: (0, 0)),
            pl.BlockSpec(rhs[1].shape, lambda n: (0, 0)),
            pl.BlockSpec(rhs[2].shape, lambda n: (0, 0)),
            pl.BlockSpec((3, WCo), lambda n: (0, 0)),
            pl.BlockSpec((3, WCo), lambda n: (0, 0)),
        ],
        out_specs=pl.BlockSpec((1, H, WCo), lambda n: (n, 0, 0)),
        scratch_shapes=[pltpu.VMEM((H + 2, WCo), jnp.bfloat16)],
        compiler_params=pltpu.CompilerParams(dimension_semantics=("parallel",)),
    )(x2, rhs[0], rhs[1], rhs[2], scale, shift)

    y = y.reshape(N, H, W, Cout)
    return jnp.transpose(y, (0, 3, 1, 2))                 # NHWC -> NCHW


# ----------------------------------------------------------------------------
# Pure-JAX reference (same bf16-operand / f32-accumulate math) for correctness
# ----------------------------------------------------------------------------
def _ref_branch3(x_nchw, params):
    x = jnp.transpose(x_nchw, (0, 2, 3, 1))
    n = len(params)
    for i, p in enumerate(params):
        scale, shift = fold_bn(p["b"], p["gamma"], p["beta"], p["mean"], p["var"])
        y = jax.lax.conv_general_dilated(
            x.astype(jnp.bfloat16), p["w"].astype(jnp.bfloat16),
            window_strides=(1, 1), padding="SAME",
            dimension_numbers=("NHWC", "HWIO", "NHWC"),
            preferred_element_type=jnp.float32)
        y = y * scale + shift
        if i < n - 1:
            y = jnp.where(y > 0, y, SLOPE * y)
        x = y
    return jnp.transpose(x, (0, 3, 1, 2))


# ----------------------------------------------------------------------------
# Deterministic parameter init
# ----------------------------------------------------------------------------
def make_conv_bn_params(key, kh, kw, cin, cout):
    k = jax.random.split(key, 6)
    bound = 1.0 / ((cin * kh * kw) ** 0.5)
    return dict(
        w=jax.random.uniform(k[0], (kh, kw, cin, cout), jnp.float32, -bound, bound),
        b=jax.random.uniform(k[1], (cout,), jnp.float32, -bound, bound),
        gamma=1.0 + 0.1 * jax.random.normal(k[2], (cout,), jnp.float32),
        beta=0.1 * jax.random.normal(k[3], (cout,), jnp.float32),
        mean=0.1 * jax.random.normal(k[4], (cout,), jnp.float32),
        var=jnp.abs(jax.random.normal(k[5], (cout,), jnp.float32)) + 0.5,
    )


def make_branch3_params(key, in_ch, out_ch):
    specs = [(3, 3, in_ch, out_ch), (3, 3, out_ch, out_ch), (3, 3, out_ch, out_ch)]
    keys = jax.random.split(key, len(specs))
    return [make_conv_bn_params(kk, *s) for kk, s in zip(keys, specs)]


# ----------------------------------------------------------------------------
if __name__ == "__main__":
    key = jax.random.PRNGKey(0)
    kp, kx = jax.random.split(key)

    N, in_ch, out_ch, H, W = 2, 4, 8, 16, 16
    params = make_branch3_params(kp, in_ch, out_ch)
    x = jax.random.normal(kx, (N, in_ch, H, W), jnp.float32)   # NCHW like PyTorch

    fwd = jax.jit(lambda xx: branch3_forward(xx, params))
    out = fwd(x)
    jax.block_until_ready(out)

    ref = _ref_branch3(x, params)
    assert out.shape == (N, out_ch, H, W)
    max_err = float(jnp.max(jnp.abs(out - ref)))
    assert jnp.allclose(out, ref, atol=5e-3, rtol=5e-3), f"max abs err = {max_err}"
    print("KERNEL_OK")
</pallas_src>

<mosaic_0001>
module attributes {stable_mosaic.version = 11 : i64} {
  func.func @_branch3_kernel(%arg0: i32, %arg1: memref<1x18x64xbf16, #tpu.memory_space<vmem>>, %arg2: memref<64x384xbf16, #tpu.memory_space<vmem>>, %arg3: memref<128x384xbf16, #tpu.memory_space<vmem>>, %arg4: memref<128x384xbf16, #tpu.memory_space<vmem>>, %arg5: memref<3x128xf32, #tpu.memory_space<vmem>>, %arg6: memref<3x128xf32, #tpu.memory_space<vmem>>, %arg7: memref<1x16x128xf32, #tpu.memory_space<vmem>>, %arg8: memref<18x128xbf16, #tpu.memory_space<vmem>>) attributes {dimension_semantics = [#tpu.dimension_semantics<parallel>], iteration_bounds = array<i64: 2>, scalar_prefetch = 0 : i64, scratch_operands = 1 : i64, tpu.core_type = #tpu.core_type<tc>, window_params = [{transform_indices = @transform_0, window_bounds = array<i64: 1, 18, 64>}, {pipeline_mode = #tpu.pipeline_mode<synchronous>, transform_indices = @transform_1, window_bounds = array<i64: 64, 384>}, {pipeline_mode = #tpu.pipeline_mode<synchronous>, transform_indices = @transform_2, window_bounds = array<i64: 128, 384>}, {pipeline_mode = #tpu.pipeline_mode<synchronous>, transform_indices = @transform_3, window_bounds = array<i64: 128, 384>}, {pipeline_mode = #tpu.pipeline_mode<synchronous>, transform_indices = @transform_4, window_bounds = array<i64: 3, 128>}, {pipeline_mode = #tpu.pipeline_mode<synchronous>, transform_indices = @transform_5, window_bounds = array<i64: 3, 128>}, {transform_indices = @transform_6, window_bounds = array<i64: 1, 16, 128>}]} {
    %cst = arith.constant 0.000000e+00 : bf16
    %0 = vector.broadcast %cst : bf16 to vector<1x128xbf16>
    %c0 = arith.constant 0 : index
    %c0_0 = arith.constant 0 : index
    %1 = vector.load %arg8[%c0, %c0_0] : memref<18x128xbf16, #tpu.memory_space<vmem>>, vector<1x128xbf16>
    tpu.vector_store %arg8[%c0, %c0_0], %0 {strides = array<i32>} : memref<18x128xbf16, #tpu.memory_space<vmem>>, vector<1x128xbf16>,
    %cst_1 = arith.constant 0.000000e+00 : bf16
    %2 = vector.broadcast %cst_1 : bf16 to vector<1x128xbf16>
    %c17 = arith.constant 17 : index
    %c0_2 = arith.constant 0 : index
    %3 = vector.load %arg8[%c17, %c0_2] : memref<18x128xbf16, #tpu.memory_space<vmem>>, vector<1x128xbf16>
    tpu.vector_store %arg8[%c17, %c0_2], %2 {strides = array<i32>} : memref<18x128xbf16, #tpu.memory_space<vmem>>, vector<1x128xbf16>,
    %c0_3 = arith.constant 0 : index
    %c0_4 = arith.constant 0 : index
    %c0_5 = arith.constant 0 : index
    %4 = vector.load %arg1[%c0_3, %c0_4, %c0_5] : memref<1x18x64xbf16, #tpu.memory_space<vmem>>, vector<1x18x64xbf16>
    %5 = vector.shape_cast %4 : vector<1x18x64xbf16> to vector<18x64xbf16>
    %c0_6 = arith.constant 0 : index
    %c0_7 = arith.constant 0 : index
    %6 = vector.load %arg2[%c0_6, %c0_7] : memref<64x384xbf16, #tpu.memory_space<vmem>>, vector<64x384xbf16>
    %cst_8 = arith.constant dense<0.000000e+00> : vector<18x384xf32>
    %7 = tpu.matmul %5, %6, %cst_8 {dimension_numbers = #tpu.dot_dimension_numbers<[1], [0], [0], [1], [0, 0, 1, 1], [], []>} : vector<18x64xbf16>, vector<64x384xbf16>, vector<18x384xf32> -> vector<18x384xf32>
    %8 = vector.extract_strided_slice %7 {offsets = [0, 0], sizes = [16, 128], strides = [1, 1]} : vector<18x384xf32> to vector<16x128xf32>
    %9 = vector.extract_strided_slice %7 {offsets = [1, 128], sizes = [16, 128], strides = [1, 1]} : vector<18x384xf32> to vector<16x128xf32>
    %10 = arith.addf %8, %9 : vector<16x128xf32>
    %11 = vector.extract_strided_slice %7 {offsets = [2, 256], sizes = [16, 128], strides = [1, 1]} : vector<18x384xf32> to vector<16x128xf32>
    %12 = arith.addf %10, %11 : vector<16x128xf32>
    %c0_9 = arith.constant 0 : index
    %c0_10 = arith.constant 0 : index
    %13 = vector.load %arg5[%c0_9, %c0_10] : memref<3x128xf32, #tpu.memory_space<vmem>>, vector<1x128xf32>
    %14 = vector.broadcast %13 : vector<1x128xf32> to vector<16x128xf32>
    %15 = arith.mulf %12, %14 : vector<16x128xf32>
    %c0_11 = arith.constant 0 : index
    %c0_12 = arith.constant 0 : index
    %16 = vector.load %arg6[%c0_11, %c0_12] : memref<3x128xf32, #tpu.memory_space<vmem>>, vector<1x128xf32>
    %17 = vector.broadcast %16 : vector<1x128xf32> to vector<16x128xf32>
    %18 = arith.addf %15, %17 : vector<16x128xf32>
    %cst_13 = arith.constant 0.000000e+00 : f32
    %19 = vector.broadcast %cst_13 : f32 to vector<16x128xf32>
    %20 = arith.cmpf ogt, %18, %19 : vector<16x128xf32>
    %cst_14 = arith.constant 0.00999999977 : f32
    %21 = vector.broadcast %cst_14 : f32 to vector<16x128xf32>
    %22 = arith.mulf %21, %18 : vector<16x128xf32>
    %23 = arith.select %20, %18, %22 : vector<16x128xi1>, vector<16x128xf32>
    %24 = arith.truncf %23 : vector<16x128xf32> to vector<16x128xbf16>
    %c1 = arith.constant 1 : index
    %c0_15 = arith.constant 0 : index
    %25 = vector.load %arg8[%c1, %c0_15] : memref<18x128xbf16, #tpu.memory_space<vmem>>, vector<16x128xbf16>
    tpu.vector_store %arg8[%c1, %c0_15], %24 {strides = array<i32>} : memref<18x128xbf16, #tpu.memory_space<vmem>>, vector<16x128xbf16>,
    %c0_16 = arith.constant 0 : index
    %c0_17 = arith.constant 0 : index
    %26 = vector.load %arg8[%c0_16, %c0_17] : memref<18x128xbf16, #tpu.memory_space<vmem>>, vector<18x128xbf16>
    %c0_18 = arith.constant 0 : index
    %c0_19 = arith.constant 0 : index
    %27 = vector.load %arg3[%c0_18, %c0_19] : memref<128x384xbf16, #tpu.memory_space<vmem>>, vector<128x384xbf16>
    %cst_20 = arith.constant dense<0.000000e+00> : vector<18x384xf32>
    %28 = tpu.matmul %26, %27, %cst_20 {dimension_numbers = #tpu.dot_dimension_numbers<[1], [0], [0], [1], [0, 0, 1, 1], [], []>} : vector<18x128xbf16>, vector<128x384xbf16>, vector<18x384xf32> -> vector<18x384xf32>
    %29 = vector.extract_strided_slice %28 {offsets = [0, 0], sizes = [16, 128], strides = [1, 1]} : vector<18x384xf32> to vector<16x128xf32>
    %30 = vector.extract_strided_slice %28 {offsets = [1, 128], sizes = [16, 128], strides = [1, 1]} : vector<18x384xf32> to vector<16x128xf32>
    %31 = arith.addf %29, %30 : vector<16x128xf32>
    %32 = vector.extract_strided_slice %28 {offsets = [2, 256], sizes = [16, 128], strides = [1, 1]} : vector<18x384xf32> to vector<16x128xf32>
    %33 = arith.addf %31, %32 : vector<16x128xf32>
    %c1_21 = arith.constant 1 : index
    %c0_22 = arith.constant 0 : index
    %34 = vector.load %arg5[%c1_21, %c0_22] : memref<3x128xf32, #tpu.memory_space<vmem>>, vector<1x128xf32>
    %35 = vector.broadcast %34 : vector<1x128xf32> to vector<16x128xf32>
    %36 = arith.mulf %33, %35 : vector<16x128xf32>
    %c1_23 = arith.constant 1 : index
    %c0_24 = arith.constant 0 : index
    %37 = vector.load %arg6[%c1_23, %c0_24] : memref<3x128xf32, #tpu.memory_space<vmem>>, vector<1x128xf32>
    %38 = vector.broadcast %37 : vector<1x128xf32> to vector<16x128xf32>
    %39 = arith.addf %36, %38 : vector<16x128xf32>
    %cst_25 = arith.constant 0.000000e+00 : f32
    %40 = vector.broadcast %cst_25 : f32 to vector<16x128xf32>
    %41 = arith.cmpf ogt, %39, %40 : vector<16x128xf32>
    %cst_26 = arith.constant 0.00999999977 : f32
    %42 = vector.broadcast %cst_26 : f32 to vector<16x128xf32>
    %43 = arith.mulf %42, %39 : vector<16x128xf32>
    %44 = arith.select %41, %39, %43 : vector<16x128xi1>, vector<16x128xf32>
    %45 = arith.truncf %44 : vector<16x128xf32> to vector<16x128xbf16>
    %c1_27 = arith.constant 1 : index
    %c0_28 = arith.constant 0 : index
    %46 = vector.load %arg8[%c1_27, %c0_28] : memref<18x128xbf16, #tpu.memory_space<vmem>>, vector<16x128xbf16>
    tpu.vector_store %arg8[%c1_27, %c0_28], %45 {strides = array<i32>} : memref<18x128xbf16, #tpu.memory_space<vmem>>, vector<16x128xbf16>,
    %c0_29 = arith.constant 0 : index
    %c0_30 = arith.constant 0 : index
    %47 = vector.load %arg8[%c0_29, %c0_30] : memref<18x128xbf16, #tpu.memory_space<vmem>>, vector<18x128xbf16>
    %c0_31 = arith.constant 0 : index
    %c0_32 = arith.constant 0 : index
    %48 = vector.load %arg4[%c0_31, %c0_32] : memref<128x384xbf16, #tpu.memory_space<vmem>>, vector<128x384xbf16>
    %cst_33 = arith.constant dense<0.000000e+00> : vector<18x384xf32>
    %49 = tpu.matmul %47, %48, %cst_33 {dimension_numbers = #tpu.dot_dimension_numbers<[1], [0], [0], [1], [0, 0, 1, 1], [], []>} : vector<18x128xbf16>, vector<128x384xbf16>, vector<18x384xf32> -> vector<18x384xf32>
    %50 = vector.extract_strided_slice %49 {offsets = [0, 0], sizes = [16, 128], strides = [1, 1]} : vector<18x384xf32> to vector<16x128xf32>
    %51 = vector.extract_strided_slice %49 {offsets = [1, 128], sizes = [16, 128], strides = [1, 1]} : vector<18x384xf32> to vector<16x128xf32>
    %52 = arith.addf %50, %51 : vector<16x128xf32>
    %53 = vector.extract_strided_slice %49 {offsets = [2, 256], sizes = [16, 128], strides = [1, 1]} : vector<18x384xf32> to vector<16x128xf32>
    %54 = arith.addf %52, %53 : vector<16x128xf32>
    %c2 = arith.constant 2 : index
    %c0_34 = arith.constant 0 : index
    %55 = vector.load %arg5[%c2, %c0_34] : memref<3x128xf32, #tpu.memory_space<vmem>>, vector<1x128xf32>
    %56 = vector.broadcast %55 : vector<1x128xf32> to vector<16x128xf32>
    %57 = arith.mulf %54, %56 : vector<16x128xf32>
    %c2_35 = arith.constant 2 : index
    %c0_36 = arith.constant 0 : index
    %58 = vector.load %arg6[%c2_35, %c0_36] : memref<3x128xf32, #tpu.memory_space<vmem>>, vector<1x128xf32>
    %59 = vector.broadcast %58 : vector<1x128xf32> to vector<16x128xf32>
    %60 = arith.addf %57, %59 : vector<16x128xf32>
    %c0_37 = arith.constant 0 : index
    %c0_38 = arith.constant 0 : index
    %c0_39 = arith.constant 0 : index
    %61 = vector.load %arg7[%c0_37, %c0_38, %c0_39] : memref<1x16x128xf32, #tpu.memory_space<vmem>>, vector<1x16x128xf32>
    %62 = vector.shape_cast %61 : vector<1x16x128xf32> to vector<16x128xf32>
    %63 = vector.shape_cast %60 : vector<16x128xf32> to vector<1x16x128xf32>
    tpu.vector_store %arg7[%c0_37, %c0_38, %c0_39], %63 {strides = array<i32>} : memref<1x16x128xf32, #tpu.memory_space<vmem>>, vector<1x16x128xf32>,
    return
  }
  func.func @transform_0(%arg0: i32) -> (i32, i32, i32) {
    %c0_i32 = arith.constant 0 : i32
    %c0_i32_0 = arith.constant 0 : i32
    %c0_i32_1 = arith.constant 0 : i32
    return %arg0, %c0_i32, %c0_i32_0 : i32, i32, i32
  }
  func.func @transform_1(%arg0: i32) -> (i32, i32) {
    %c0_i32 = arith.constant 0 : i32
    %c0_i32_0 = arith.constant 0 : i32
    %c0_i32_1 = arith.constant 0 : i32
    return %c0_i32, %c0_i32_0 : i32, i32
  }
  func.func @transform_2(%arg0: i32) -> (i32, i32) {
    %c0_i32 = arith.constant 0 : i32
    %c0_i32_0 = arith.constant 0 : i32
    %c0_i32_1 = arith.constant 0 : i32
    return %c0_i32, %c0_i32_0 : i32, i32
  }
  func.func @transform_3(%arg0: i32) -> (i32, i32) {
    %c0_i32 = arith.constant 0 : i32
    %c0_i32_0 = arith.constant 0 : i32
    %c0_i32_1 = arith.constant 0 : i32
    return %c0_i32, %c0_i32_0 : i32, i32
  }
  func.func @transform_4(%arg0: i32) -> (i32, i32) {
    %c0_i32 = arith.constant 0 : i32
    %c0_i32_0 = arith.constant 0 : i32
    %c0_i32_1 = arith.constant 0 : i32
    return %c0_i32, %c0_i32_0 : i32, i32
  }
  func.func @transform_5(%arg0: i32) -> (i32, i32) {
    %c0_i32 = arith.constant 0 : i32
    %c0_i32_0 = arith.constant 0 : i32
    %c0_i32_1 = arith.constant 0 : i32
    return %c0_i32, %c0_i32_0 : i32, i32
  }
  func.func @transform_6(%arg0: i32) -> (i32, i32, i32) {
    %c0_i32 = arith.constant 0 : i32
    %c0_i32_0 = arith.constant 0 : i32
    %c0_i32_1 = arith.constant 0 : i32
    return %arg0, %c0_i32, %c0_i32_0 : i32, i32, i32
  }
}

</mosaic_0001>

<bundles_post_ra>
// kernel: tile.26
= control target key start
LH: loop header
LB: loop body
LE: loop exit
PB: predicated region body
PF: predicated region fallthrough
CT: control target
= control target key end

     0   :  { %s28_s0 = inlined_call_operand.vmem [shape: f32[8], index: 0, kind: input, shape index: {}]   ;;  %s29_s1 = inlined_call_operand.vmem [shape: f32[16,8], index: 1, kind: output, shape index: {}]  }
   0x1   :  { %v4_v0 = vld [vmem:[%s28_s0] ss:$0 sm:$0xff] }
   0x2   :  { %5 = vst [vmem:[%s29_s1] sm:$0xff] %v4_v0 }
   0x3   :  { %8 = vst [vmem:[%s29_s1 + $0x8] sm:$0xff] %v4_v0 }

// kernel: tile.42
= control target key start
LH: loop header
LB: loop body
LE: loop exit
PB: predicated region body
PF: predicated region fallthrough
CT: control target
= control target key end

     0   :  { %s131_s10 = smov 120   ;;  %s132_s11 = smov 104   ;;  %vm3_vm0 = vcmask 64512   ;;  %vm9_vm1 = vcmask 1048512   ;;  %vm15_vm2 = vcmask 982912   ;;  %vm21_vm3 = vcmask 917312   ;;  %s207_s0 = inlined_call_operand.vmem [shape: f32[16,8], index: 0, kind: input, shape index: {}]   ;;  %s208_s1 = inlined_call_operand.vmem [shape: f32[1,128], index: 1, kind: output, shape index: {}]  }
   0x1   :  { %v101_v0 = vld [vmem:[%s207_s0 + $0xf] sm:$0x1]   ;;  %v103_v1 = vld [vmem:[%s207_s0 + $0xd] sm:$0x1]   ;;  %v105_v2 = vld [vmem:[%s207_s0 + $0xb] sm:$0x1]  }
   0x2   :  { %7 = vrot.lane.b32.xlu0 %v101_v0, %s131_s10  ;;  %19 = vrot.lane.b32.xlu1 %v103_v1, %s132_s11  ;;  %s133_s14 = smov 88   ;;  %v102_v3 = vld [vmem:[%s207_s0 + $0xe] sm:$0x1]   ;;  %v104_v4 = vld [vmem:[%s207_s0 + $0xc] sm:$0x1]   ;;  %s134_s19 = smov 112  }
   0x3   :  { %31 = vrot.lane.b32.xlu2 %v105_v2, %s133_s14  ;;  %s135_s20 = smov 96   ;;  %v106_v5 = vld [vmem:[%s207_s0 + $0xa] sm:$0x1]   ;;  %s136_s23 = smov 80   ;;  %v107_v6 = vld [vmem:[%s207_s0 + $0x9] sm:$0x1]  }
   0x4   :  { %v108_v7 = vld [vmem:[%s207_s0 + $0x8] sm:$0x1]   ;;  %s137_s28 = smov 72   ;;  %s138_s29 = smov 64   ;;  %v109_v8 = vld [vmem:[%s207_s0 + $0x7] sm:$0x1]  }
   0x5   :  { %s139_s3 = smov 56   ;;  %v110_v9 = vld [vmem:[%s207_s0 + $0x6] sm:$0x1]   ;;  %v111_v10 = vld [vmem:[%s207_s0 + $0x5] sm:$0x1]   ;;  %s140_s8 = smov 48  }
   0x6   :  { %s141_s9 = smov 40   ;;  %v112_v11 = vld [vmem:[%s207_s0 + $0x4] sm:$0x1]   ;;  %s142_s12 = smov 32   ;;  %v113_v12 = vld [vmem:[%s207_s0 + $0x3] sm:$0x1]  }
   0x7   :  { %v114_v13 = vld [vmem:[%s207_s0 + $0x2] sm:$0x1]   ;;  %s143_s17 = smov 24   ;;  %s144_s18 = smov 16   ;;  %v115_v14 = vld [vmem:[%s207_s0 + $0x1] sm:$0x1]  }
   0x8   :  { %s145_s21 = smov 8   ;;  %v2_v15 = vld [vmem:[%s207_s0] sm:$0x1]   ;;  %vm27_vm4 = vcmask 851712   ;;  %vm33_vm5 = vcmask 786112   ;;  %vm39_vm6 = vcmask 720512  }
   0x9   :  { %4 = vst.msk [vmem:[#allocation0] sm:$0x1] %vm3_vm0, %v2_v15   ;;  %vm45_vm7 = vcmask 654912   ;;  %vm51_vm8 = vcmask 589312   ;;  %vm57_vm9 = vcmask 523712   ;;  %vm63_vm10 = vcmask 458112  }
   0xa   :  { %13 = vrot.lane.b32.xlu0 %v102_v3, %s134_s19  ;;  %25 = vrot.lane.b32.xlu1 %v104_v4, %s135_s20  ;;  %vm69_vm11 = vcmask 392512   ;;  %vm75_vm12 = vcmask 326912   ;;  %vm81_vm13 = vcmask 261312   ;;  %vm87_vm14 = vcmask 195712  }
   0xb   :  { %37 = vrot.lane.b32.xlu2 %v106_v5, %s136_s23  ;;  %vm93_vm15 = vcmask 130112  }
  0x12   :  { %43 = vrot.lane.b32.xlu0 %v107_v6, %s137_s28  ;;  %49 = vrot.lane.b32.xlu1 %v108_v7, %s138_s29 }
  0x13   :  { %55 = vrot.lane.b32.xlu2 %v109_v8, %s139_s3 }
  0x1a   :  { %61 = vrot.lane.b32.xlu0 %v110_v9, %s140_s8  ;;  %67 = vrot.lane.b32.xlu1 %v111_v10, %s141_s9 }
  0x1b   :  { %73 = vrot.lane.b32.xlu2 %v112_v11, %s142_s12 }
  0x22   :  { %79 = vrot.lane.b32.xlu0 %v113_v12, %s143_s17  ;;  %85 = vrot.lane.b32.xlu1 %v114_v13, %s144_s18 }
  0x23   :  { %91 = vrot.lane.b32.xlu2 %v115_v14, %s145_s21 }
  0x5d   :  { %v32_v16 = vpop.permute.xlu2 %31  }
  0x65   :  { %v38_v17 = vpop.permute.xlu2 %37  }
  0x6d   :  { %v56_v18 = vpop.permute.xlu2 %55  }
  0x74   :  { %v8_v19 = vpop.permute.xlu0 %7   ;;  %v20_v20 = vpop.permute.xlu1 %19  }
  0x75   :  { %10 = vst.msk [vmem:[#allocation0] sm:$0x1] %vm9_vm1, %v8_v19   ;;  %v74_v21 = vpop.permute.xlu2 %73  }
  0x7c   :  { %v14_v22 = vpop.permute.xlu0 %13   ;;  %v26_v23 = vpop.permute.xlu1 %25  }
  0x7d   :  { %16 = vst.msk [vmem:[#allocation0] sm:$0x1] %vm15_vm2, %v14_v22   ;;  %v92_v24 = vpop.permute.xlu2 %91  }
  0x7e   :  { %22 = vst.msk [vmem:[#allocation0] sm:$0x1] %vm21_vm3, %v20_v20  }
  0x7f   :  { %28 = vst.msk [vmem:[#allocation0] sm:$0x1] %vm27_vm4, %v26_v23  }
  0x80   :  { %34 = vst.msk [vmem:[#allocation0] sm:$0x1] %vm33_vm5, %v32_v16  }
  0x81   :  { %40 = vst.msk [vmem:[#allocation0] sm:$0x1] %vm39_vm6, %v38_v17  }
  0x84   :  { %v44_v25 = vpop.permute.xlu0 %43   ;;  %v50_v26 = vpop.permute.xlu1 %49  }
  0x85   :  { %46 = vst.msk [vmem:[#allocation0] sm:$0x1] %vm45_vm7, %v44_v25  }
  0x86   :  { %52 = vst.msk [vmem:[#allocation0] sm:$0x1] %vm51_vm8, %v50_v26  }
  0x87   :  { %58 = vst.msk [vmem:[#allocation0] sm:$0x1] %vm57_vm9, %v56_v18  }
  0x8c   :  { %v62_v27 = vpop.permute.xlu0 %61   ;;  %v68_v28 = vpop.permute.xlu1 %67  }
  0x8d   :  { %64 = vst.msk [vmem:[#allocation0] sm:$0x1] %vm63_vm10, %v62_v27  }
  0x8e   :  { %70 = vst.msk [vmem:[#allocation0] sm:$0x1] %vm69_vm11, %v68_v28  }
  0x8f   :  { %76 = vst.msk [vmem:[#allocation0] sm:$0x1] %vm75_vm12, %v74_v21  }
  0x94   :  { %v80_v29 = vpop.permute.xlu0 %79   ;;  %v86_v30 = vpop.permute.xlu1 %85  }
  0x95   :  { %82 = vst.msk [vmem:[#allocation0] sm:$0x1] %vm81_vm13, %v80_v29  }
  0x96   :  { %88 = vst.msk [vmem:[#allocation0] sm:$0x1] %vm87_vm14, %v86_v30  }
  0x97   :  { %94 = vst.msk [vmem:[#allocation0] sm:$0x1] %vm93_vm15, %v92_v24  }
  0x9e   :  { %v97_v31 = vld [vmem:[#allocation0] sm:$0x1] }
  0x9f   :  { %100 = vst [vmem:[%s208_s1] sm:$0x1] %v97_v31 }

// kernel: _lambda_.1
= control target key start
LH: loop header
LB: loop body
LE: loop exit
PB: predicated region body
PF: predicated region fallthrough
CT: control target
= control target key end

     0   :  { %s1493_s21 = smov 0   ;;  %s1938_s0 = inlined_call_operand.vmem [shape: bf16[2,18,64], index: 0, kind: input, shape index: {}]   ;;  %s1939_s1 = inlined_call_operand.vmem [shape: bf16[64,384], index: 1, kind: input, shape index: {}]   ;;  %s1940_s2 = inlined_call_operand.vmem [shape: bf16[128,384], index: 2, kind: input, shape index: {}]   ;;  %s1941_s3 = inlined_call_operand.vmem [shape: bf16[128,384], index: 3, kind: input, shape index: {}]   ;;  %s1942_s4 = inlined_call_operand.vmem [shape: f32[3,128], index: 4, kind: input, shape index: {}]   ;;  %s1943_s5 = inlined_call_operand.vmem [shape: f32[3,128], index: 5, kind: input, shape index: {}]   ;;  %s1944_s6 = inlined_call_operand.vmem [shape: f32[2,16,128], index: 6, kind: output, shape index: {}]  }
   0x1 LB: > { %s1095_s22 = sadd.s32 4294967295, %s1456_s21   ;;  %p1099_p0 = scmp.ge.s32.totalorder %s1456_s21, 1  ;;  %s1456_s21 = sphi %s1493_s21, %s16_s21  }
   0x2   : > { %p212_p1 = scmp.lt.s32.totalorder %s1456_s21, 3 }
   0x4   : > { %p213_p2 = pnand %p1099_p0, %p212_p1 }
   0x5   : > { %p242_p3 = scmp.lt.s32.totalorder (!%p213_p2), %s1095_s22, 1 }
   0x6   : > { %216 = sbr.rel (%p213_p2) target bundleno = 540 (0x21c), region = 44 }
   0xb   : > { %v1374_v0 = vld [vmem:[%s1939_s1 + $0x4c] sm:$0xf]  ;;  %v1147_v1 = vld [vmem:[%s1939_s1 + $0x54] sm:$0xf0]  ;;  %v1153_v2 = vld [vmem:[%s1939_s1 + $0x50] sm:$0xf] }
   0xc   : > { %v1150_v3 = vor.u32 %v1374_v0, %v1147_v1  ;;  %v1376_v4 = vld [vmem:[%s1939_s1 + $0x58] sm:$0xf0]  ;;  %v1371_v5 = vld [vmem:[%s1939_s1 + $0x34] sm:$0xf]  ;;  %v1135_v6 = vld [vmem:[%s1939_s1 + $0x3c] sm:$0xf0] }
   0xd   : > { %v1154_v7 = vor.u32 %v1376_v4, %v1153_v2  ;;  %v1141_v8 = vld [vmem:[%s1939_s1 + $0x38] sm:$0xf]  ;;  %v1373_v9 = vld [vmem:[%s1939_s1 + $0x40] sm:$0xf0]  ;;  %v1145_v10 = vld [vmem:[%s1939_s1 + $0x48] sm:$0xf]  ;;  %v1138_v11 = vor.u32 %v1371_v5, %v1135_v6 }
   0xe   : > { %383 = vmatpush.bf16.msra.mxu1 %v1150_v3  ;;  %v1375_v12 = vld [vmem:[%s1939_s1 + $0x50] sm:$0xf0]  ;;  %v1142_v13 = vor.u32 %v1373_v9, %v1141_v8  ;;  %v1368_v15 = vld [vmem:[%s1939_s1 + $0x1c] sm:$0xf]  ;;  %v1123_v16 = vld [vmem:[%s1939_s1 + $0x24] sm:$0xf0] }
   0xf   : > { %401 = vmatpush.bf16.msra.mxu2 %v1154_v7  ;;  %v1146_v14 = vor.u32 %v1375_v12, %v1145_v10  ;;  %v1133_v17 = vld [vmem:[%s1939_s1 + $0x30] sm:$0xf]  ;;  %v1129_v18 = vld [vmem:[%s1939_s1 + $0x20] sm:$0xf]  ;;  %v1370_v19 = vld [vmem:[%s1939_s1 + $0x28] sm:$0xf0]  ;;  %v1126_v24 = vor.u32 %v1368_v15, %v1123_v16 }
  0x10   : > { %v1372_v20 = vld [vmem:[%s1939_s1 + $0x38] sm:$0xf0]  ;;  %v1365_v22 = vld [vmem:[%s1939_s1 + $0x4] sm:$0xf]  ;;  %v1111_v23 = vld [vmem:[%s1939_s1 + $0xc] sm:$0xf0]  ;;  %v1130_v28 = vor.u32 %v1370_v19, %v1129_v18 }
  0x11   : > { %366 = vmatpush.bf16.msra.mxu0 %v1146_v14  ;;  %v1134_v21 = vor.u32 %v1372_v20, %v1133_v17  ;;  %v1117_v25 = vld [vmem:[%s1939_s1 + $0x8] sm:$0xf]  ;;  %v1121_v26 = vld [vmem:[%s1939_s1 + $0x18] sm:$0xf]  ;;  %v1369_v27 = vld [vmem:[%s1939_s1 + $0x20] sm:$0xf0]  ;;  %v1114_v31 = vor.u32 %v1365_v22, %v1111_v23 }
  0x12   : > { %384 = vmatpush.bf16.msra.mxu1 %v1138_v11  ;;  %v1367_v29 = vld [vmem:[%s1939_s1 + $0x10] sm:$0xf0]  ;;  %s1952_s22 = smov (!%p242_p3, %s1095_s22), 1  ;;  %v1122_v30 = vor.u32 %v1369_v27, %v1121_v26  ;;  %v1109_v32 = vld [vmem:[%s1939_s1] sm:$0xf]  ;;  %vm355_vm0 = vcmask 523264  }
  0x13   : > { %402 = vmatpush.bf16.msra.mxu2 %v1142_v13  ;;  %s1435_s23 = smul.u32 12, %s1952_s22  ;;  %v1366_v33 = vld [vmem:[%s1939_s1 + $0x8] sm:$0xf0]  ;;  %v1118_v34 = vor.u32 %v1367_v29, %v1117_v25  ;;  %vm253_vm1 = vcmask 1040384   ;;  %vm254_vm2 = vsmask.f32 256 }
  0x14   : > { %v1110_v36 = vor.u32 %v1366_v33, %v1109_v32  ;;  %v256_v40 = vld [vmem:[#allocation2] sm:$0x1]  ;;  %vm1584_vm3 = vmand %vm253_vm1, %vm254_vm2  ;;  %vm259_vm4 = vsmask.f32 7938  ;;  %v261_v42 = vld [vmem:[#allocation2 + $0x8] sm:$0x1] }
  0x15   : > { %367 = vmatpush.bf16.msra.mxu0 %v1134_v21  ;;  %s246_s30 = scalar_lea.vmem %s1938_s0, %s1435_s23  ;;  %v257_v43 = vsel %vm1584_vm3, 0, %v256_v40  ;;  %vm260_vm5 = vmand %vm253_vm1, %vm259_vm4  ;;  %v1399_v45 = vld [vmem:[%s1940_s2 + $0xac] sm:$0xf]  ;;  %v1253_v46 = vld [vmem:[%s1940_s2 + $0xb4] sm:$0xf0]  ;;  %vm418_vm6 = vcmask 1046528  }
  0x16   : > { %385 = vmatpush.bf16.msra.mxu1 %v1126_v24  ;;  %v1364_v35 = vld [vmem:[%s246_s30] sm:$0xff]  ;;  %v266_v37 = vld [vmem:[%s246_s30 + $0x8] sm:$0x1]  ;;  %258 = vst [vmem:[#allocation2] sm:$0x1] %v257_v43  ;;  %v262_v44 = vsel %vm260_vm5, 0, %v261_v42  ;;  %v1256_v47 = vor.u32 %v1399_v45, %v1253_v46 }
  0x17   : > { %403 = vmatpush.bf16.msra.mxu2 %v1130_v28  ;;  %v288_v38 = vunpack.c.l.b16 %v266_v37  ;;  %263 = vst [vmem:[#allocation2 + $0x8] sm:$0x1] %v262_v44  ;;  %v1251_v48 = vld [vmem:[%s1940_s2 + $0xa8] sm:$0xf]  ;;  %v1400_v49 = vld [vmem:[%s1940_s2 + $0xb0] sm:$0xf0] }
  0x18   : > { %v1259_v50 = vld [vmem:[%s1940_s2 + $0xb0] sm:$0xf]  ;;  %v1252_v51 = vor.u32 %v1400_v49, %v1251_v48  ;;  %v1401_v52 = vld [vmem:[%s1940_s2 + $0xb8] sm:$0xf0]  ;;  %v1396_v54 = vld [vmem:[%s1940_s2 + $0x94] sm:$0xf] }
  0x19   : > { %368 = vmatpush.bf16.msra.mxu0 %v1122_v30  ;;  %v290_v39 = vpack.c.b16 %v288_v38, %v288_v38  ;;  %v1260_v53 = vor.u32 %v1401_v52, %v1259_v50  ;;  %v1241_v55 = vld [vmem:[%s1940_s2 + $0x9c] sm:$0xf0]  ;;  %v1239_v56 = vld [vmem:[%s1940_s2 + $0x90] sm:$0xf]  ;;  %v1397_v58 = vld [vmem:[%s1940_s2 + $0x98] sm:$0xf0] }
  0x1a   : > { %386 = vmatpush.bf16.msra.mxu1 %v1114_v31  ;;  %661 = vmatpush.bf16.msra.mxu3 %v1252_v51  ;;  %v1244_v57 = vor.u32 %v1396_v54, %v1241_v55  ;;  %v1247_v59 = vld [vmem:[%s1940_s2 + $0x98] sm:$0xf]  ;;  %v1398_v60 = vld [vmem:[%s1940_s2 + $0xa0] sm:$0xf0]  ;;  %v1240_v61 = vor.u32 %v1397_v58, %v1239_v56  ;;  %v1393_v63 = vld [vmem:[%s1940_s2 + $0x7c] sm:$0xf] }
  0x1b   : > { %404 = vmatpush.bf16.msra.mxu2 %v1118_v34  ;;  %v1248_v62 = vor.u32 %v1398_v60, %v1247_v59  ;;  %v1229_v0 = vld [vmem:[%s1940_s2 + $0x84] sm:$0xf0]  ;;  %v1227_v1 = vld [vmem:[%s1940_s2 + $0x78] sm:$0xf]  ;;  %v1394_v3 = vld [vmem:[%s1940_s2 + $0x80] sm:$0xf0] }
  0x1c   : > { %v1232_v2 = vor.u32 %v1393_v63, %v1229_v0  ;;  %v1235_v4 = vld [vmem:[%s1940_s2 + $0x80] sm:$0xf]  ;;  %v1395_v5 = vld [vmem:[%s1940_s2 + $0x88] sm:$0xf0]  ;;  %v1228_v6 = vor.u32 %v1394_v3, %v1227_v1  ;;  %v1390_v9 = vld [vmem:[%s1940_s2 + $0x64] sm:$0xf] }
  0x1d   : > { %1157 = vmatmul.msk.bf16.vlgmr.msra.gmra.mxu1 %vm355_vm0, %v1364_v35  ;;  %369 = vmatpush.bf16.msra.mxu0 %v1110_v36  ;;  %v1236_v7 = vor.u32 %v1395_v5, %v1235_v4  ;;  %v1217_v10 = vld [vmem:[%s1940_s2 + $0x6c] sm:$0xf0]  ;;  %v1215_v12 = vld [vmem:[%s1940_s2 + $0x60] sm:$0xf]  ;;  %v1391_v14 = vld [vmem:[%s1940_s2 + $0x68] sm:$0xf0] }
  0x1e   : > { %1159 = vmatmul.msk.bf16.vlgmr.msra.gmra.mxu2 %vm355_vm0, %v1364_v35  ;;  %696 = vmatpush.bf16.msrb.mxu1 %v1260_v53  ;;  %v1220_v11 = vor.u32 %v1390_v9, %v1217_v10  ;;  %v1223_v15 = vld [vmem:[%s1940_s2 + $0x68] sm:$0xf]  ;;  %v1216_v16 = vor.u32 %v1391_v14, %v1215_v12  ;;  %v1392_v17 = vld [vmem:[%s1940_s2 + $0x70] sm:$0xf0]  ;;  %v1387_v19 = vld [vmem:[%s1940_s2 + $0x4c] sm:$0xf] }
  0x1f   : > { %662 = vmatpush.bf16.msra.mxu3 %v1240_v61  ;;  %v1224_v18 = vor.u32 %v1392_v17, %v1223_v15  ;;  %v1205_v20 = vld [vmem:[%s1940_s2 + $0x54] sm:$0xf0]  ;;  %v1203_v22 = vld [vmem:[%s1940_s2 + $0x48] sm:$0xf]  ;;  %v1388_v23 = vld [vmem:[%s1940_s2 + $0x50] sm:$0xf0] }
  0x20   : > { %1155 = vmatmul.msk.bf16.vlgmr.msra.gmra.mxu0 %vm355_vm0, %v1364_v35  ;;  %v1208_v21 = vor.u32 %v1387_v19, %v1205_v20  ;;  %v1204_v25 = vor.u32 %v1388_v23, %v1203_v22  ;;  %v1211_v26 = vld [vmem:[%s1940_s2 + $0x50] sm:$0xf]  ;;  %v1389_v27 = vld [vmem:[%s1940_s2 + $0x58] sm:$0xf0]  ;;  %v1384_v31 = vld [vmem:[%s1940_s2 + $0x34] sm:$0xf] }
  0x21   : > { %678 = vmatpush.bf16.msrb.mxu0 %v1256_v47  ;;  %v1212_v29 = vor.u32 %v1389_v27, %v1211_v26  ;;  %v1193_v32 = vld [vmem:[%s1940_s2 + $0x3c] sm:$0xf0]  ;;  %v1191_v34 = vld [vmem:[%s1940_s2 + $0x30] sm:$0xf]  ;;  %v1385_v35 = vld [vmem:[%s1940_s2 + $0x38] sm:$0xf0] }
  0x22   : > { %697 = vmatpush.bf16.msrb.mxu1 %v1248_v62  ;;  %v1196_v33 = vor.u32 %v1384_v31, %v1193_v32  ;;  %v1199_v36 = vld [vmem:[%s1940_s2 + $0x38] sm:$0xf]  ;;  %v1192_v38 = vor.u32 %v1385_v35, %v1191_v34  ;;  %vm431_vm7 = vcmask 1045504   ;;  %v1381_v43 = vld [vmem:[%s1940_s2 + $0x1c] sm:$0xf]  ;;  %vm479_vm9 = vcmask 1043456  }
  0x23   : > { %663 = vmatpush.bf16.msra.mxu3 %v1228_v6  ;;  %v1181_v44 = vld [vmem:[%s1940_s2 + $0x24] sm:$0xf0]  ;;  %v1179_v45 = vld [vmem:[%s1940_s2 + $0x18] sm:$0xf]  ;;  %v1382_v48 = vld [vmem:[%s1940_s2 + $0x20] sm:$0xf0] }
  0x24   : > { %v1184_v47 = vor.u32 %v1381_v43, %v1181_v44  ;;  %v1187_v49 = vld [vmem:[%s1940_s2 + $0x20] sm:$0xf]  ;;  %v1383_v50 = vld [vmem:[%s1940_s2 + $0x28] sm:$0xf0]  ;;  %v1180_v52 = vor.u32 %v1382_v48, %v1179_v45  ;;  %v1378_v54 = vld [vmem:[%s1940_s2 + $0x4] sm:$0xf] }
  0x25   : > { %679 = vmatpush.bf16.msrb.mxu0 %v1244_v57  ;;  %v1188_v53 = vor.u32 %v1383_v50, %v1187_v49  ;;  %v1169_v55 = vld [vmem:[%s1940_s2 + $0xc] sm:$0xf0]  ;;  %v1167_v56 = vld [vmem:[%s1940_s2] sm:$0xf]  ;;  %v1379_v61 = vld [vmem:[%s1940_s2 + $0x8] sm:$0xf0] }
  0x26   : > { %698 = vmatpush.bf16.msrb.mxu1 %v1236_v7  ;;  %v1172_v60 = vor.u32 %v1378_v54, %v1169_v55  ;;  %v1175_v62 = vld [vmem:[%s1940_s2 + $0x8] sm:$0xf]  ;;  %v1444_v0 = vld [vmem:[%s1942_s4] ss:$0 sm:$0xff]  ;;  %v1380_v1 = vld [vmem:[%s1940_s2 + $0x10] sm:$0xf0]  ;;  %v1168_v4 = vor.u32 %v1379_v61, %v1167_v56 }
  0x27   : > { %664 = vmatpush.bf16.msra.mxu3 %v1216_v16  ;;  %v1445_v6 = vld [vmem:[%s1943_s5] ss:$0 sm:$0xff]  ;;  %v1176_v7 = vor.u32 %v1380_v1, %v1175_v62  ;;  %vm1746_vm10 = vmand %vm479_vm9, %vm259_vm4  ;;  %vm457_vm12 = vsmask.f32 4368  ;;  %v1424_v50 = vld [vmem:[%s1941_s3 + $0xac] sm:$0xf] }
  0x28   : > { %vm1753_vm13 = vmor %vm254_vm2, %vm457_vm12  ;;  %v1425_v54 = vld [vmem:[%s1941_s3 + $0xb0] sm:$0xf0]  ;;  %v1359_v55 = vld [vmem:[%s1941_s3 + $0xb0] sm:$0xf]  ;;  %s1363_s11 = sshll.u32 %s1952_s22, 4 }
  0x29   : > { %680 = vmatpush.bf16.msrb.mxu0 %v1232_v2  ;;  %v1339_v61 = vld [vmem:[%s1941_s3 + $0x90] sm:$0xf]  ;;  %v1423_v1 = vld [vmem:[%s1941_s3 + $0xa0] sm:$0xf0]  ;;  %s251_s16 = scalar_lea.vmem %s1944_s6, %s1363_s11 }
  0x2a   : > { %699 = vmatpush.bf16.msrb.mxu1 %v1224_v18 }
  0x2b   : > { %665 = vmatpush.bf16.msra.mxu3 %v1204_v25 }
  0x2d   : > { %1158 = vmatmul.msk.bf16.gmra.mxu1 %vm355_vm0, %v290_v39  ;;  %681 = vmatpush.bf16.msrb.mxu0 %v1220_v11 }
  0x2e   : > { %1160 = vmatmul.msk.bf16.gmra.mxu2 %vm355_vm0, %v290_v39  ;;  %700 = vmatpush.bf16.msrb.mxu1 %v1212_v29  ;;  %v481_v29 = vld [vmem:[#allocation2] sm:$0xf] }
  0x2f   : > { %666 = vmatpush.bf16.msra.mxu3 %v1192_v38 }
  0x30   : > { %1156 = vmatmul.msk.bf16.gmra.mxu0 %vm355_vm0, %v290_v39  ;;  %v1386_v39 = vld [vmem:[%s1940_s2 + $0x40] sm:$0xf0] }
  0x31   : > { %682 = vmatpush.bf16.msrb.mxu0 %v1208_v21  ;;  %v1200_v42 = vor.u32 %v1386_v39, %v1199_v36  ;;  %v485_v39 = vld [vmem:[#allocation2 + $0x8] sm:$0x1] }
  0x33   : > { %701 = vmatpush.bf16.msrb.mxu1 %v1200_v42  ;;  %667 = vmatpush.bf16.msra.mxu3 %v1180_v52 }
  0x35   : > { %683 = vmatpush.bf16.msrb.mxu0 %v1196_v33 }
  0x37   : > { %702 = vmatpush.bf16.msrb.mxu1 %v1188_v53  ;;  %668 = vmatpush.bf16.msra.mxu3 %v1168_v4  ;;  %v1351_v53 = vld [vmem:[%s1941_s3 + $0xa8] sm:$0xf]  ;;  %v1418_v4 = vld [vmem:[%s1941_s3 + $0x7c] sm:$0xf] }
  0x38   : > { %v1352_v56 = vor.u32 %v1425_v54, %v1351_v53  ;;  %v1407_v54 = vld [vmem:[%s1941_s3 + $0x20] sm:$0xf0] }
  0x39   : > { %684 = vmatpush.bf16.msrb.mxu0 %v1184_v47 }
  0x3a   : > { %953 = vmatpush.bf16.msrb.mxu2 %v1352_v56 }
  0x3b   : > { %703 = vmatpush.bf16.msrb.mxu1 %v1176_v7 }
  0x3d   : > { %685 = vmatpush.bf16.msrb.mxu0 %v1172_v60  ;;  %v1341_v60 = vld [vmem:[%s1941_s3 + $0x9c] sm:$0xf0] }
  0x9a   : > { %v388_v8 = vpop.f32.mrf.mxu1 }
  0x9b   : > { %v419_v40 = vrot.slane %v388_v8, 1 }
  0x9d   : > { %v371_v13 = vpop.f32.mrf.mxu0 }
  0xa1   : > { %v406_v24 = vpop.f32.mrf.mxu2 }
  0xa2   : > { %v390_v28 = vpop.f32.mrf.mxu1  ;;  %v432_v57 = vrot.slane %v406_v24, 2 }
  0xa3   : > { %v420_v30 = vrot.slane %v390_v28, 1 }
  0xa5   : > { %v373_v37 = vpop.f32.mrf.mxu0  ;;  %v421_v46 = vsel %vm418_vm6, %v419_v40, %v420_v30 }
  0xa6   : > { %v426_v63 = vadd.f32 %v421_v46, %v371_v13 }
  0xa9   : > { %v408_v51 = vpop.f32.mrf.mxu2 }
  0xaa   : > { %v433_v58 = vrot.slane %v408_v51, 2  ;;  %v393_v59 = vpop.f32.mrf.mxu1  ;;  %v1353_v51 = vld [vmem:[%s1941_s3 + $0xb4] sm:$0xf0] }
  0xab   : > { %v422_v3 = vrot.slane %v393_v59, 1  ;;  %v1356_v52 = vor.u32 %v1424_v50, %v1353_v51  ;;  %v1421_v59 = vld [vmem:[%s1941_s3 + $0x94] sm:$0xf] }
  0xac   : > { %v434_v2 = vsel %vm431_vm7, %v432_v57, %v433_v58  ;;  %v1426_v57 = vld [vmem:[%s1941_s3 + $0xb8] sm:$0xf0]  ;;  %v1344_v62 = vor.u32 %v1421_v59, %v1341_v60  ;;  %v1408_v59 = vld [vmem:[%s1941_s3 + $0x28] sm:$0xf0]  ;;  %v1403_v60 = vld [vmem:[%s1941_s3 + $0x4] sm:$0xf] }
  0xad   : > { %v439_v5 = vadd.f32 %v434_v2, %v426_v63  ;;  %v376_v8 = vpop.f32.mrf.mxu0  ;;  %v423_v10 = vsel %vm418_vm6, %v420_v30, %v422_v3  ;;  %970 = vmatpush.bf16.msrb.mxu3 %v1356_v52  ;;  %v1422_v63 = vld [vmem:[%s1941_s3 + $0x98] sm:$0xf0] }
  0xae   : > { %v427_v16 = vadd.f32 %v423_v10, %v373_v37  ;;  %v1340_v2 = vor.u32 %v1422_v63, %v1339_v61  ;;  %v1419_v8 = vld [vmem:[%s1941_s3 + $0x80] sm:$0xf0]  ;;  %v1420_v10 = vld [vmem:[%s1941_s3 + $0x88] sm:$0xf0]  ;;  %v1269_v63 = vld [vmem:[%s1941_s3 + $0xc] sm:$0xf0] }
  0xaf   : > { %v443_v9 = vmul.f32 %v1444_v0, %v439_v5  ;;  %v1329_v5 = vld [vmem:[%s1941_s3 + $0x84] sm:$0xf0] }
  0xb0   : > { %954 = vmatpush.bf16.msrb.mxu2 %v1340_v2  ;;  %v1332_v7 = vor.u32 %v1418_v4, %v1329_v5  ;;  %v1272_v4 = vor.u32 %v1403_v60, %v1269_v63 }
  0xb1   : > { %v447_v11 = vadd.f32 %v1445_v6, %v443_v9  ;;  %v411_v12 = vpop.f32.mrf.mxu2  ;;  %971 = vmatpush.bf16.msrb.mxu3 %v1344_v62  ;;  %v1335_v9 = vld [vmem:[%s1941_s3 + $0x80] sm:$0xf] }
  0xb2   : > { %v435_v13 = vrot.slane %v411_v12, 2  ;;  %v395_v14 = vpop.f32.mrf.mxu1  ;;  %v1336_v12 = vor.u32 %v1420_v10, %v1335_v9 }
  0xb3   : > { %vm449_vm8 = vcmp.gt.f32.partialorder %v447_v11, 0.0  ;;  %v451_v15 = vmul.f32 0.01, %v447_v11  ;;  %v1317_v14 = vld [vmem:[%s1941_s3 + $0x6c] sm:$0xf0] }
  0xb4   : > { %v436_v17 = vsel %vm431_vm7, %v433_v58, %v435_v13  ;;  %v1360_v58 = vor.u32 %v1426_v57, %v1359_v55  ;;  %v1415_v13 = vld [vmem:[%s1941_s3 + $0x64] sm:$0xf]  ;;  %v1287_v55 = vld [vmem:[%s1941_s3 + $0x20] sm:$0xf] }
  0xb5   : > { %v453_v18 = vsel %vm449_vm8, %v447_v11, %v451_v15  ;;  %v440_v19 = vadd.f32 %v436_v17, %v427_v16  ;;  %v377_v20 = vpop.f32.mrf.mxu0  ;;  %972 = vmatpush.bf16.msrb.mxu3 %v1332_v7  ;;  %v1315_v15 = vld [vmem:[%s1941_s3 + $0x60] sm:$0xf]  ;;  %v1320_v16 = vor.u32 %v1415_v13, %v1317_v14  ;;  %v1416_v17 = vld [vmem:[%s1941_s3 + $0x68] sm:$0xf0]  ;;  %v1288_v62 = vor.u32 %v1408_v59, %v1287_v55  ;;  %v1405_v7 = vld [vmem:[%s1941_s3 + $0x10] sm:$0xf0] }
  0xb6   : > { %v455_v21 = vpack.c.bf16 %v453_v18, %v453_v18  ;;  %988 = vmatpush.bf16.msra.mxu0 %v1360_v58  ;;  %1427 = vmatpush.bf16.msra.mxu1 %v1360_v58  ;;  %v1323_v18 = vld [vmem:[%s1941_s3 + $0x68] sm:$0xf]  ;;  %v1316_v20 = vor.u32 %v1416_v17, %v1315_v15 }
  0xb7   : > { %v444_v22 = vmul.f32 %v1444_v0, %v440_v19  ;;  %v1347_v0 = vld [vmem:[%s1941_s3 + $0x98] sm:$0xf]  ;;  %v1417_v19 = vld [vmem:[%s1941_s3 + $0x70] sm:$0xf0] }
  0xb8   : > { %v460_v23 = vshrl.u32 %v455_v21, 16  ;;  %v463_v27 = vshll.u32 %v455_v21, 16  ;;  %v1348_v3 = vor.u32 %v1423_v1, %v1347_v0  ;;  %v1324_v21 = vor.u32 %v1417_v19, %v1323_v18  ;;  %v1267_v0 = vld [vmem:[%s1941_s3] sm:$0xf]  ;;  %v1404_v1 = vld [vmem:[%s1941_s3 + $0x8] sm:$0xf0] }
  0xb9   : > { %v448_v24 = vadd.f32 %v1445_v6, %v444_v22  ;;  %v413_v25 = vpop.f32.mrf.mxu2  ;;  %v1327_v6 = vld [vmem:[%s1941_s3 + $0x78] sm:$0xf]  ;;  %973 = vmatpush.bf16.msrb.mxu3 %v1320_v16  ;;  %v1268_v5 = vor.u32 %v1404_v1, %v1267_v0 }
  0xba   : > { %v462_v26 = vrot.slane %v460_v23, 7  ;;  %989 = vmatpush.bf16.msra.mxu0 %v1348_v3  ;;  %1428 = vmatpush.bf16.msra.mxu1 %v1348_v3  ;;  %v1328_v11 = vor.u32 %v1419_v8, %v1327_v6  ;;  %v1412_v23 = vld [vmem:[%s1941_s3 + $0x4c] sm:$0xf]  ;;  %v1303_v25 = vld [vmem:[%s1941_s3 + $0x48] sm:$0xf] }
  0xbb   : > { %vm450_vm11 = vcmp.gt.f32.partialorder %v448_v24, 0.0  ;;  %v452_v30 = vmul.f32 0.01, %v448_v24  ;;  %v1446_v3 = vld [vmem:[%s1942_s4 + $0x1] ss:$0 sm:$0xff] }
  0xbc   : > { %v465_v31 = vor.u32 %v463_v27, %v462_v26  ;;  %v466_v40 = vrot.slane %v462_v26, 4  ;;  %955 = vmatpush.bf16.msrb.mxu2 %v1328_v11  ;;  %v1275_v6 = vld [vmem:[%s1941_s3 + $0x8] sm:$0xf]  ;;  %v1447_v11 = vld [vmem:[%s1943_s5 + $0x1] ss:$0 sm:$0xff] }
  0xbd   : > { %v454_v32 = vsel %vm450_vm11, %v448_v24, %v452_v30  ;;  %v1305_v24 = vld [vmem:[%s1941_s3 + $0x54] sm:$0xf0]  ;;  %v1311_v30 = vld [vmem:[%s1941_s3 + $0x50] sm:$0xf]  ;;  %v1276_v9 = vor.u32 %v1405_v7, %v1275_v6  ;;  %v1449_v7 = vld [vmem:[%s1943_s5 + $0x2] ss:$0 sm:$0xff] }
  0xbe   : > { %v482_v33 = vsel %vm1746_vm10, %v465_v31, %v481_v29  ;;  %v456_v34 = vpack.c.bf16 %v454_v32, %v454_v32  ;;  %990 = vmatpush.bf16.msra.mxu0 %v1336_v12  ;;  %1429 = vmatpush.bf16.msra.mxu1 %v1336_v12  ;;  %v1308_v27 = vor.u32 %v1412_v23, %v1305_v24  ;;  %v1413_v29 = vld [vmem:[%s1941_s3 + $0x50] sm:$0xf0]  ;;  %v1414_v32 = vld [vmem:[%s1941_s3 + $0x58] sm:$0xf0] }
  0xbf   : > { %483 = vst [vmem:[#allocation2] sm:$0xf] %v482_v33  ;;  %v1304_v31 = vor.u32 %v1413_v29, %v1303_v25  ;;  %v1312_v33 = vor.u32 %v1414_v32, %v1311_v30 }
  0xc0   : > { %v468_v35 = vshrl.u32 %v456_v34, 16  ;;  %v471_v37 = vshll.u32 %v456_v34, 16  ;;  %956 = vmatpush.bf16.msrb.mxu2 %v1316_v20  ;;  %974 = vmatpush.bf16.msrb.mxu3 %v1308_v27  ;;  %v1409_v34 = vld [vmem:[%s1941_s3 + $0x34] sm:$0xf] }
  0xc2   : > { %v470_v36 = vrot.slane %v468_v35, 7  ;;  %991 = vmatpush.bf16.msra.mxu0 %v1324_v21  ;;  %1430 = vmatpush.bf16.msra.mxu1 %v1324_v21  ;;  %v1293_v35 = vld [vmem:[%s1941_s3 + $0x3c] sm:$0xf0] }
  0xc4   : > { %v473_v42 = vor.u32 %v471_v37, %v470_v36  ;;  %v475_v43 = vrot.slane %v470_v36, 4  ;;  %957 = vmatpush.bf16.msrb.mxu2 %v1304_v31  ;;  %v1291_v36 = vld [vmem:[%s1941_s3 + $0x30] sm:$0xf]  ;;  %v1296_v37 = vor.u32 %v1409_v34, %v1293_v35 }
  0xc6   : > { %v474_v44 = vsel %vm1753_vm13, %v466_v40, %v473_v42  ;;  %v486_v45 = vsel %vm1584_vm3, %v475_v43, %v485_v39  ;;  %992 = vmatpush.bf16.msra.mxu0 %v1312_v33  ;;  %1431 = vmatpush.bf16.msra.mxu1 %v1312_v33  ;;  %v1410_v39 = vld [vmem:[%s1941_s3 + $0x38] sm:$0xf0]  ;;  %v1299_v40 = vld [vmem:[%s1941_s3 + $0x38] sm:$0xf]  ;;  %v1411_v42 = vld [vmem:[%s1941_s3 + $0x40] sm:$0xf0] }
  0xc7   : > { %484 = vst [vmem:[#allocation2 + $0x4] sm:$0xf] %v474_v44  ;;  %v1292_v44 = vor.u32 %v1410_v39, %v1291_v36  ;;  %975 = vmatpush.bf16.msrb.mxu3 %v1296_v37  ;;  %v488_v37 = vld [vmem:[#allocation2] sm:$0xf] }
  0xc8   : > { %487 = vst [vmem:[#allocation2 + $0x8] sm:$0x1] %v486_v45  ;;  %v1300_v45 = vor.u32 %v1411_v42, %v1299_v40 }
  0xc9   : > { %958 = vmatpush.bf16.msrb.mxu2 %v1292_v44 }
  0xca   : > { %993 = vmatpush.bf16.msra.mxu0 %v1300_v45  ;;  %1432 = vmatpush.bf16.msra.mxu1 %v1300_v45 }
  0xce   : > { %v1377_v46 = vld [vmem:[#allocation2] sm:$0xff]  ;;  %994 = vmatpush.bf16.msra.mxu0 %v1288_v62  ;;  %1433 = vmatpush.bf16.msra.mxu1 %v1288_v62 }
  0xcf   : > { %669 = vmatmul.bf16.vlgmr.msra.gmra.mxu3 %v1377_v46  ;;  %686 = vmatmul.bf16.vlgmr.msrb.gmra.mxu0 %v1377_v46  ;;  %v490_v47 = vld [vmem:[#allocation2 + $0x8] sm:$0x1] }
  0xd0   : > { %704 = vmatmul.bf16.vlgmr.msrb.gmra.mxu1 %v1377_v46  ;;  %v528_v48 = vunpack.c.l.b16 %v490_v47  ;;  %v1406_v47 = vld [vmem:[%s1941_s3 + $0x1c] sm:$0xf] }
  0xd2   : > { %v530_v49 = vpack.c.b16 %v528_v48, %v528_v48  ;;  %v1281_v48 = vld [vmem:[%s1941_s3 + $0x24] sm:$0xf0]  ;;  %995 = vmatpush.bf16.msra.mxu0 %v1276_v9  ;;  %1434 = vmatpush.bf16.msra.mxu1 %v1276_v9 }
  0xd3   : > { %v1284_v53 = vor.u32 %v1406_v47, %v1281_v48 }
  0xd5   : > { %976 = vmatpush.bf16.msrb.mxu3 %v1284_v53 }
  0xd9   : > { %977 = vmatpush.bf16.msrb.mxu3 %v1272_v4  ;;  %v1448_v4 = vld [vmem:[%s1942_s4 + $0x2] ss:$0 sm:$0xff] }
  0xdf   : > { %674 = vmatmul.bf16.gmra.mxu3 %v530_v49  ;;  %691 = vmatmul.bf16.gmra.mxu0 %v530_v49 }
  0xe0   : > { %709 = vmatmul.bf16.gmra.mxu1 %v530_v49  ;;  %v1279_v49 = vld [vmem:[%s1941_s3 + $0x18] sm:$0xf] }
  0xe1   : > { %v1280_v58 = vor.u32 %v1407_v54, %v1279_v49 }
  0xe3   : > { %959 = vmatpush.bf16.msrb.mxu2 %v1280_v58 }
  0xe7   : > { %960 = vmatpush.bf16.msrb.mxu2 %v1268_v5 }
 0x14c   : > { %v687_v22 = vpop.f32.mrf.mxu0 }
 0x14d   : > { %v705_v26 = vpop.f32.mrf.mxu1  ;;  %v717_v50 = vrot.slane %v687_v22, 1 }
 0x14e   : > { %v729_v56 = vrot.slane %v705_v26, 2 }
 0x152   : > { %v670_v43 = vpop.f32.mrf.mxu3 }
 0x154   : > { %v689_v46 = vpop.f32.mrf.mxu0 }
 0x155   : > { %v718_v51 = vrot.slane %v689_v46, 1  ;;  %v707_v52 = vpop.f32.mrf.mxu1 }
 0x156   : > { %v730_v57 = vrot.slane %v707_v52, 2 }
 0x157   : > { %v719_v61 = vsel %vm418_vm6, %v717_v50, %v718_v51  ;;  %v777_v50 = vld [vmem:[#allocation2 + $0x8] sm:$0x1] }
 0x158   : > { %v724_v2 = vadd.f32 %v719_v61, %v670_v43  ;;  %v731_v8 = vsel %vm431_vm7, %v729_v56, %v730_v57 }
 0x15a   : > { %v736_v10 = vadd.f32 %v731_v8, %v724_v2  ;;  %v672_v12 = vpop.f32.mrf.mxu3 }
 0x15c   : > { %v740_v13 = vmul.f32 %v1446_v3, %v736_v10  ;;  %v692_v14 = vpop.f32.mrf.mxu0 }
 0x15d   : > { %v720_v15 = vrot.slane %v692_v14, 1  ;;  %v710_v16 = vpop.f32.mrf.mxu1 }
 0x15e   : > { %v744_v17 = vadd.f32 %v1447_v11, %v740_v13  ;;  %v732_v18 = vrot.slane %v710_v16, 2 }
 0x15f   : > { %v721_v19 = vsel %vm418_vm6, %v718_v51, %v720_v15 }
 0x160   : > { %vm746_vm14 = vcmp.gt.f32.partialorder %v744_v17, 0.0  ;;  %v748_v20 = vmul.f32 0.01, %v744_v17  ;;  %v725_v21 = vadd.f32 %v721_v19, %v672_v12  ;;  %v733_v22 = vsel %vm431_vm7, %v730_v57, %v732_v18 }
 0x162   : > { %v750_v23 = vsel %vm746_vm14, %v744_v17, %v748_v20  ;;  %v737_v24 = vadd.f32 %v733_v22, %v725_v21  ;;  %v675_v25 = vpop.f32.mrf.mxu3 }
 0x163   : > { %v752_v26 = vpack.c.bf16 %v750_v23, %v750_v23 }
 0x164   : > { %v741_v27 = vmul.f32 %v1446_v3, %v737_v24  ;;  %v694_v29 = vpop.f32.mrf.mxu0 }
 0x165   : > { %v755_v30 = vshrl.u32 %v752_v26, 16  ;;  %v712_v31 = vpop.f32.mrf.mxu1  ;;  %v758_v34 = vshll.u32 %v752_v26, 16 }
 0x166   : > { %v745_v32 = vadd.f32 %v1447_v11, %v741_v27 }
 0x167   : > { %v757_v33 = vrot.slane %v755_v30, 7 }
 0x168   : > { %vm747_vm15 = vcmp.gt.f32.partialorder %v745_v32, 0.0  ;;  %v749_v35 = vmul.f32 0.01, %v745_v32 }
 0x169   : > { %v760_v36 = vor.u32 %v758_v34, %v757_v33  ;;  %v761_v47 = vrot.slane %v757_v33, 4 }
 0x16a   : > { %v751_v39 = vsel %vm747_vm15, %v745_v32, %v749_v35  ;;  %v676_v40 = vpop.f32.mrf.mxu3 }
 0x16b   : > { %v774_v42 = vsel %vm1746_vm10, %v760_v36, %v488_v37  ;;  %v753_v43 = vpack.c.bf16 %v751_v39, %v751_v39 }
 0x16c   : > { %775 = vst [vmem:[#allocation2] sm:$0xf] %v774_v42 }
 0x16d   : > { %v763_v44 = vshrl.u32 %v753_v43, 16  ;;  %v766_v46 = vshll.u32 %v753_v43, 16 }
 0x16f   : > { %v765_v45 = vrot.slane %v763_v44, 7 }
 0x171   : > { %v768_v48 = vor.u32 %v766_v46, %v765_v45  ;;  %v770_v49 = vrot.slane %v765_v45, 4 }
 0x173   : > { %v769_v51 = vsel %vm1753_vm13, %v761_v47, %v768_v48  ;;  %v778_v52 = vsel %vm1584_vm3, %v770_v49, %v777_v50 }
 0x174   : > { %776 = vst [vmem:[#allocation2 + $0x4] sm:$0xf] %v769_v51 }
 0x175   : > { %779 = vst [vmem:[#allocation2 + $0x8] sm:$0x1] %v778_v52 }
 0x17b   : > { %v1402_v53 = vld [vmem:[#allocation2] sm:$0xff] }
 0x17c   : > { %v782_v28 = vld [vmem:[#allocation2 + $0x8] sm:$0x1]  ;;  %961 = vmatmul.bf16.vlgmr.msrb.gmra.mxu2 %v1402_v53  ;;  %978 = vmatmul.bf16.vlgmr.msrb.gmra.mxu3 %v1402_v53 }
 0x17d   : > { %v820_v54 = vunpack.c.l.b16 %v782_v28  ;;  %996 = vmatmul.bf16.vlgmr.msra.gmra.mxu0 %v1402_v53 }
 0x17f   : > { %v822_v55 = vpack.c.b16 %v820_v54, %v820_v54 }
 0x181   : > { %1001 = vmatmul.bf16.vlgmr.msra.gmra.mxu1 %v822_v55 }
 0x18c   : > { %966 = vmatmul.bf16.gmra.mxu2 %v822_v55  ;;  %983 = vmatmul.bf16.gmra.mxu3 %v822_v55 }
 0x1fa   : > { %v997_v56 = vpop.f32.mrf.mxu0 }
 0x1fb   : > { %v1021_v1 = vrot.slane %v997_v56, 2 }
 0x1fe   : > { %v1002_v57 = vpop.f32.mrf.mxu1 }
 0x1ff   : > { %v962_v38 = vpop.f32.mrf.mxu2  ;;  %v979_v58 = vpop.f32.mrf.mxu3  ;;  %v1024_v13 = vrot.slane %v1002_v57, 2 }
 0x200   : > { %v1009_v62 = vrot.slane %v979_v58, 1 }
 0x202   : > { %v999_v59 = vpop.f32.mrf.mxu0 }
 0x203   : > { %v1022_v63 = vrot.slane %v999_v59, 2 }
 0x205   : > { %v1023_v5 = vsel %vm431_vm7, %v1021_v1, %v1022_v63  ;;  %v1025_v16 = vsel %vm431_vm7, %v1022_v63, %v1024_v13 }
 0x206   : > { %v1004_v41 = vpop.f32.mrf.mxu1 }
 0x207   : > { %v964_v60 = vpop.f32.mrf.mxu2  ;;  %v981_v61 = vpop.f32.mrf.mxu3 }
 0x208   : > { %v1010_v0 = vrot.slane %v981_v61, 1 }
 0x20a   : > { %v1011_v2 = vsel %vm418_vm6, %v1009_v62, %v1010_v0 }
 0x20b   : > { %v1016_v3 = vadd.f32 %v1011_v2, %v962_v38 }
 0x20d   : > { %v1028_v6 = vadd.f32 %v1023_v5, %v1016_v3 }
 0x20f   : > { %v1032_v8 = vmul.f32 %v1448_v4, %v1028_v6  ;;  %v967_v9 = vpop.f32.mrf.mxu2  ;;  %v984_v10 = vpop.f32.mrf.mxu3 }
 0x210   : > { %v1012_v11 = vrot.slane %v984_v10, 1 }
 0x211   : > { %v1036_v12 = vadd.f32 %v1449_v7, %v1032_v8 }
 0x212   : > { %v1013_v14 = vsel %vm418_vm6, %v1010_v0, %v1012_v11 }
 0x213   : > { %1038 = vst [vmem:[%s251_s16] sm:$0xff] %v1036_v12  ;;  %v1017_v15 = vadd.f32 %v1013_v14, %v964_v60 }
 0x215   : > { %v1029_v17 = vadd.f32 %v1025_v16, %v1017_v15 }
 0x217   : > { %v1033_v18 = vmul.f32 %v1448_v4, %v1029_v17  ;;  %v968_v19 = vpop.f32.mrf.mxu2  ;;  %v986_v20 = vpop.f32.mrf.mxu3 }
 0x219   : > { %v1037_v21 = vadd.f32 %v1449_v7, %v1033_v18 }
 0x21b   : > { %1039 = vst [vmem:[%s251_s16 + $0x8] sm:$0xff] %v1037_v21 }
 0x21c PF: > { %s16_s21 = sadd.s32 1, %s1456_s21  }
 0x21d   : > { %p13_p4 = scmp.ge.s32.totalorder %s16_s21, 4  }
 0x21f   :  { %15 = sbr.rel (!%p13_p4) target bundleno = 1 (0x1), region = 74 }

</bundles_post_ra>
